<compile_context>
chip_gen: v5e
topology: v5e:2x2
jax: 0.10.0
libtpu: 0.0.40
codegen_flags: <defaults>
</compile_context>

<pallas_src>
import functools

import jax
import jax.numpy as jnp
from jax.experimental import pallas as pl
from jax.experimental.pallas import tpu as pltpu


def _attention_cor_eca_kernel(x_ref, th_ref, tw_ref, ph_ref, pw_ref, bw_ref,
                              out_ref, *, H):
    """Whole-problem block. x_ref / out_ref: (B*C, H*W), lane-dense, in VMEM."""
    x = x_ref[...]                                              # (BC, HW)

    # --- pooled sums over H / W via 0/1 selector matmuls (K = HW) ----------
    p_h = ph_ref[...].astype(x.dtype)                           # (HW, W)
    p_w = pw_ref[...].astype(x.dtype)                           # (HW, H)
    s_h = jnp.dot(x, p_h, preferred_element_type=jnp.float32)   # (BC, W)
    s_w = jnp.dot(x, p_w, preferred_element_type=jnp.float32)   # (BC, H)

    # --- block-diag banded channel conv (mean scale folded in) + sigmoid ---
    a_h = jax.nn.sigmoid(
        jnp.dot(th_ref[...], s_h, preferred_element_type=jnp.float32))  # (BC, W)
    a_w = jax.nn.sigmoid(
        jnp.dot(tw_ref[...], s_w, preferred_element_type=jnp.float32))  # (BC, H)

    # --- broadcast gates back to (BC, HW) -----------------------------------
    # a_h repeats as whole W-wide lane blocks -> plain lane-block copies.
    g_h = jnp.concatenate([a_h] * H, axis=-1)                   # (BC, HW)
    # a_w repeats each element W times along lanes -> keep as a tiny 0/1 dot.
    g_w = jnp.dot(a_w, bw_ref[...].astype(jnp.float32),
                  preferred_element_type=jnp.float32)           # (BC, HW)

    g = g_h * g_w
    out_ref[...] = (x * g.astype(x.dtype)).astype(out_ref.dtype)


def _band_matrix(w1d, C):
    """(C,C) T with T[c,c'] = w1d[c'-c+pad] (0 outside the band).

    T @ m is exactly the zero-padded cross-correlation of m along the channel
    axis, i.e. PyTorch's Conv2d with a (k,1) / (1,k) kernel and pad k//2."""
    k = w1d.shape[0]
    pad = k // 2
    c = jnp.arange(C)[:, None]
    cp = jnp.arange(C)[None, :]
    idx = cp - c + pad
    valid = (idx >= 0) & (idx < k)
    return jnp.where(valid, w1d[jnp.clip(idx, 0, k - 1)], 0.0).astype(jnp.float32)


def _selector_matrices(H, W, dtype=jnp.bfloat16):
    """Pure 0/1 pooling / broadcast selectors (exact in bf16 for any H, W)."""
    HW = H * W
    hw = jnp.arange(HW)
    h_idx = hw // W
    w_idx = hw % W
    # sum over H:   (x @ p_h)[r, w] = sum_h x[r, h*W + w]
    p_h = (w_idx[:, None] == jnp.arange(W)[None, :]).astype(dtype)   # (HW, W)
    # sum over W:   (x @ p_w)[r, h] = sum_w x[r, h*W + w]
    p_w = (h_idx[:, None] == jnp.arange(H)[None, :]).astype(dtype)   # (HW, H)
    # broadcast over W: (a_w @ b_w)[r, h*W + w] = a_w[r, h]
    b_w = (jnp.arange(H)[:, None] == h_idx[None, :]).astype(dtype)   # (H, HW)
    return p_h, p_w, b_w


@jax.jit
def attention_cor_eca(x_nchw, w_gate_h, w_gate_w):
    """Forward of AttentionCorECAModule.

    x_nchw: (B, C, H, W); w_gate_h / w_gate_w: (k,) conv taps (bias-free)."""
    B, C, H, W = x_nchw.shape
    HW, BC = H * W, B * C

    x_flat = x_nchw.reshape(BC, HW)        # free row-major merge, no transpose

    # Banded channel-conv matrices, with the 1/H (1/W) mean scale folded in,
    # replicated block-diagonally over the batch so batches never mix.
    t_h = jnp.kron(jnp.eye(B, dtype=jnp.float32), _band_matrix(w_gate_h, C) / H)
    t_w = jnp.kron(jnp.eye(B, dtype=jnp.float32), _band_matrix(w_gate_w, C) / W)
    p_h, p_w, b_w = _selector_matrices(H, W)

    vmem = pl.BlockSpec(memory_space=pltpu.MemorySpace.VMEM)
    out_flat = pl.pallas_call(
        functools.partial(_attention_cor_eca_kernel, H=H),
        out_shape=jax.ShapeDtypeStruct((BC, HW), x_nchw.dtype),
        in_specs=[vmem] * 6,
        out_specs=vmem,
    )(x_flat, t_h, t_w, p_h, p_w, b_w)

    return out_flat.reshape(B, C, H, W)


def reference_forward(x, w_gate_h, w_gate_w):
    """Pure-JAX reference matching the PyTorch module exactly."""
    B, C, H, W = x.shape
    k = w_gate_h.shape[0]
    pad = k // 2

    m_h = jnp.mean(x, axis=2)                    # (B, C, W)
    m_w = jnp.mean(x, axis=3)                    # (B, C, H)

    def conv_c(m, w1d):                          # zero-padded xcorr along C
        mp = jnp.pad(m, ((0, 0), (pad, pad), (0, 0)))
        return sum(w1d[j] * mp[:, j:j + C, :] for j in range(k))

    a_h = jax.nn.sigmoid(conv_c(m_h, w_gate_h))  # (B, C, W) -> broadcast over H
    a_w = jax.nn.sigmoid(conv_c(m_w, w_gate_w))  # (B, C, H) -> broadcast over W
    return x * a_h[:, :, None, :] * a_w[:, :, :, None]


if __name__ == "__main__":
    B, C, H, W = 2, 4, 16, 16
    k_size = 5
    key = jax.random.PRNGKey(0)
    kx, kh, kw = jax.random.split(key, 3)
    x = jax.random.normal(kx, (B, C, H, W), jnp.float32)
    w_gate_h = 0.5 * jax.random.normal(kh, (k_size,), jnp.float32)
    w_gate_w = 0.5 * jax.random.normal(kw, (k_size,), jnp.float32)

    out = jax.block_until_ready(attention_cor_eca(x, w_gate_h, w_gate_w))
    ref = jax.block_until_ready(reference_forward(x, w_gate_h, w_gate_w))

    assert out.shape == (B, C, H, W), out.shape
    max_err = float(jnp.max(jnp.abs(out - ref)))
    assert max_err < 1e-4, f"max abs error too large: {max_err}"
    print("KERNEL_OK")
</pallas_src>

<mosaic_0001>
module attributes {stable_mosaic.version = 11 : i64} {
  func.func @_attention_cor_eca_kernel(%arg0: memref<8x256xf32, #tpu.memory_space<vmem>>, %arg1: memref<8x8xf32, #tpu.memory_space<vmem>>, %arg2: memref<8x8xf32, #tpu.memory_space<vmem>>, %arg3: memref<256x16xbf16, #tpu.memory_space<vmem>>, %arg4: memref<256x16xbf16, #tpu.memory_space<vmem>>, %arg5: memref<16x256xbf16, #tpu.memory_space<vmem>>, %arg6: memref<8x256xf32, #tpu.memory_space<vmem>>) attributes {dimension_semantics = [], scalar_prefetch = 0 : i64, scratch_operands = 0 : i64, tpu.core_type = #tpu.core_type<tc>} {
    %c0 = arith.constant 0 : index
    %c0_0 = arith.constant 0 : index
    %0 = vector.load %arg0[%c0, %c0_0] : memref<8x256xf32, #tpu.memory_space<vmem>>, vector<8x256xf32>
    %c0_1 = arith.constant 0 : index
    %c0_2 = arith.constant 0 : index
    %1 = vector.load %arg3[%c0_1, %c0_2] : memref<256x16xbf16, #tpu.memory_space<vmem>>, vector<256x16xbf16>
    %2 = arith.extf %1 : vector<256x16xbf16> to vector<256x16xf32>
    %c0_3 = arith.constant 0 : index
    %c0_4 = arith.constant 0 : index
    %3 = vector.load %arg4[%c0_3, %c0_4] : memref<256x16xbf16, #tpu.memory_space<vmem>>, vector<256x16xbf16>
    %4 = arith.extf %3 : vector<256x16xbf16> to vector<256x16xf32>
    %cst = arith.constant dense<0.000000e+00> : vector<8x16xf32>
    %5 = tpu.matmul %0, %2, %cst {dimension_numbers = #tpu.dot_dimension_numbers<[1], [0], [0], [1], [0, 0, 1, 1], [], []>} : vector<8x256xf32>, vector<256x16xf32>, vector<8x16xf32> -> vector<8x16xf32>
    %cst_5 = arith.constant dense<0.000000e+00> : vector<8x16xf32>
    %6 = tpu.matmul %0, %4, %cst_5 {dimension_numbers = #tpu.dot_dimension_numbers<[1], [0], [0], [1], [0, 0, 1, 1], [], []>} : vector<8x256xf32>, vector<256x16xf32>, vector<8x16xf32> -> vector<8x16xf32>
    %c0_6 = arith.constant 0 : index
    %c0_7 = arith.constant 0 : index
    %7 = vector.load %arg1[%c0_6, %c0_7] : memref<8x8xf32, #tpu.memory_space<vmem>>, vector<8x8xf32>
    %cst_8 = arith.constant dense<0.000000e+00> : vector<8x16xf32>
    %8 = tpu.matmul %7, %5, %cst_8 {dimension_numbers = #tpu.dot_dimension_numbers<[1], [0], [0], [1], [0, 0, 1, 1], [], []>} : vector<8x8xf32>, vector<8x16xf32>, vector<8x16xf32> -> vector<8x16xf32>
    %9 = arith.negf %8 : vector<8x16xf32>
    %10 = math.exp %9 : vector<8x16xf32>
    %cst_9 = arith.constant 1.000000e+00 : f32
    %11 = vector.broadcast %cst_9 : f32 to vector<8x16xf32>
    %12 = arith.addf %11, %10 : vector<8x16xf32>
    %13 = arith.divf %11, %12 : vector<8x16xf32>
    %c0_10 = arith.constant 0 : index
    %c0_11 = arith.constant 0 : index
    %14 = vector.load %arg2[%c0_10, %c0_11] : memref<8x8xf32, #tpu.memory_space<vmem>>, vector<8x8xf32>
    %cst_12 = arith.constant dense<0.000000e+00> : vector<8x16xf32>
    %15 = tpu.matmul %14, %6, %cst_12 {dimension_numbers = #tpu.dot_dimension_numbers<[1], [0], [0], [1], [0, 0, 1, 1], [], []>} : vector<8x8xf32>, vector<8x16xf32>, vector<8x16xf32> -> vector<8x16xf32>
    %16 = arith.negf %15 : vector<8x16xf32>
    %17 = math.exp %16 : vector<8x16xf32>
    %cst_13 = arith.constant 1.000000e+00 : f32
    %18 = vector.broadcast %cst_13 : f32 to vector<8x16xf32>
    %19 = arith.addf %18, %17 : vector<8x16xf32>
    %20 = arith.divf %18, %19 : vector<8x16xf32>
    %21 = tpu.concatenate %13, %13, %13, %13, %13, %13, %13, %13, %13, %13, %13, %13, %13, %13, %13, %13 in 1 : vector<8x16xf32>, vector<8x16xf32>, vector<8x16xf32>, vector<8x16xf32>, vector<8x16xf32>, vector<8x16xf32>, vector<8x16xf32>, vector<8x16xf32>, vector<8x16xf32>, vector<8x16xf32>, vector<8x16xf32>, vector<8x16xf32>, vector<8x16xf32>, vector<8x16xf32>, vector<8x16xf32>, vector<8x16xf32> -> vector<8x256xf32>
    %c0_14 = arith.constant 0 : index
    %c0_15 = arith.constant 0 : index
    %22 = vector.load %arg5[%c0_14, %c0_15] : memref<16x256xbf16, #tpu.memory_space<vmem>>, vector<16x256xbf16>
    %23 = arith.extf %22 : vector<16x256xbf16> to vector<16x256xf32>
    %cst_16 = arith.constant dense<0.000000e+00> : vector<8x256xf32>
    %24 = tpu.matmul %20, %23, %cst_16 {dimension_numbers = #tpu.dot_dimension_numbers<[1], [0], [0], [1], [0, 0, 1, 1], [], []>} : vector<8x16xf32>, vector<16x256xf32>, vector<8x256xf32> -> vector<8x256xf32>
    %25 = arith.mulf %21, %24 : vector<8x256xf32>
    %26 = arith.mulf %0, %25 : vector<8x256xf32>
    %c0_17 = arith.constant 0 : index
    %c0_18 = arith.constant 0 : index
    %27 = vector.load %arg6[%c0_17, %c0_18] : memref<8x256xf32, #tpu.memory_space<vmem>>, vector<8x256xf32>
    tpu.vector_store %arg6[%c0_17, %c0_18], %26 {strides = array<i32>} : memref<8x256xf32, #tpu.memory_space<vmem>>, vector<8x256xf32>,
    return
  }
}

</mosaic_0001>

<bundles_post_ra>
// kernel: attention_cor_eca.1
= control target key start
LH: loop header
LB: loop body
LE: loop exit
PB: predicated region body
PF: predicated region fallthrough
CT: control target
= control target key end

     0   :  { %vm234_vm0 = vcmask 64512   ;;  %vm342_vm8 = vcmask 130048   ;;  %s597_s22 = smov 96   ;;  %s598_s23 = smov 64   ;;  %vm344_vm10 = vcmask 261120   ;;  %vm346_vm11 = vcmask 392192   ;;  %s769_s3 = inlined_call_operand.vmem [shape: bf16[256,16], index: 3, kind: input, shape index: {}]   ;;  %s770_s4 = inlined_call_operand.vmem [shape: bf16[256,16], index: 4, kind: input, shape index: {}]   ;;  %s771_s0 = inlined_call_operand.vmem [shape: f32[8,256], index: 0, kind: input, shape index: {}]   ;;  %s772_s1 = inlined_call_operand.vmem [shape: f32[8,8], index: 1, kind: input, shape index: {}]   ;;  %s773_s2 = inlined_call_operand.vmem [shape: f32[8,8], index: 2, kind: input, shape index: {}]   ;;  %s774_s5 = inlined_call_operand.vmem [shape: bf16[16,256], index: 5, kind: input, shape index: {}]   ;;  %s775_s6 = inlined_call_operand.vmem [shape: f32[8,256], index: 6, kind: output, shape index: {}]  }
   0x1   :  { %v555_v0 = vld [vmem:[%s769_s3 + $0x38] sm:$0xff]   ;;  %v554_v8 = vld [vmem:[%s769_s3 + $0x30] sm:$0xff]   ;;  %v553_v20 = vld [vmem:[%s769_s3 + $0x28] sm:$0xff]   ;;  %s599_s24 = smov 32   ;;  %s600_s25 = smov 112   ;;  %vm348_vm12 = vcmask 523264  }
   0x2   :  { %v563_v1 = vld [vmem:[%s769_s3 + $0x78] sm:$0xff]   ;;  %v452_v3 = vunpack.c.h.bf16 %v555_v0  ;;  %v451_v7 = vunpack.c.l.bf16 %v555_v0  ;;  %v562_v9 = vld [vmem:[%s769_s3 + $0x70] sm:$0xff]   ;;  %v448_v16 = vunpack.c.h.bf16 %v554_v8  ;;  %v561_v21 = vld [vmem:[%s769_s3 + $0x68] sm:$0xff]   ;;  %v447_v22 = vunpack.c.l.bf16 %v554_v8 }
   0x3   :  { %v570_v2 = vld [vmem:[%s770_s4 + $0x38] sm:$0xff]   ;;  %v484_v4 = vunpack.c.h.bf16 %v563_v1  ;;  %v483_v11 = vunpack.c.l.bf16 %v563_v1  ;;  %v569_v14 = vld [vmem:[%s770_s4 + $0x30] sm:$0xff]   ;;  %v480_v17 = vunpack.c.h.bf16 %v562_v9  ;;  %v479_v23 = vunpack.c.l.bf16 %v562_v9  ;;  %v568_v24 = vld [vmem:[%s770_s4 + $0x28] sm:$0xff]  }
   0x4   :  { %v516_v5 = vunpack.c.h.bf16 %v570_v2  ;;  %v578_v6 = vld [vmem:[%s770_s4 + $0x78] sm:$0xff]   ;;  %v515_v12 = vunpack.c.l.bf16 %v570_v2  ;;  %v577_v15 = vld [vmem:[%s770_s4 + $0x70] sm:$0xff]   ;;  %153 = vmatpush.msra.mxu0 %v452_v3  ;;  %v512_v18 = vunpack.c.h.bf16 %v569_v14  ;;  %v576_v25 = vld [vmem:[%s770_s4 + $0x68] sm:$0xff]   ;;  %v511_v26 = vunpack.c.l.bf16 %v569_v14 }
   0x5   :  { %v548_v10 = vunpack.c.h.bf16 %v578_v6  ;;  %v547_v13 = vunpack.c.l.bf16 %v578_v6  ;;  %173 = vmatpush.msra.mxu1 %v484_v4  ;;  %v544_v19 = vunpack.c.h.bf16 %v577_v15  ;;  %v543_v27 = vunpack.c.l.bf16 %v577_v15  ;;  %v552_v32 = vld [vmem:[%s769_s3 + $0x20] sm:$0xff]   ;;  %v551_v44 = vld [vmem:[%s769_s3 + $0x18] sm:$0xff]   ;;  %v550_v56 = vld [vmem:[%s769_s3 + $0x10] sm:$0xff]  }
   0x6   :  { %193 = vmatpush.msra.mxu2 %v516_v5  ;;  %154 = vmatpush.msra.mxu0 %v451_v7  ;;  %v444_v28 = vunpack.c.h.bf16 %v553_v20  ;;  %v476_v29 = vunpack.c.h.bf16 %v561_v21  ;;  %v508_v30 = vunpack.c.h.bf16 %v568_v24  ;;  %v540_v31 = vunpack.c.h.bf16 %v576_v25  ;;  %v560_v33 = vld [vmem:[%s769_s3 + $0x60] sm:$0xff]   ;;  %v559_v45 = vld [vmem:[%s769_s3 + $0x58] sm:$0xff]   ;;  %v558_v57 = vld [vmem:[%s769_s3 + $0x50] sm:$0xff]  }
   0x7   :  { %213 = vmatpush.msra.mxu3 %v548_v10  ;;  %174 = vmatpush.msra.mxu1 %v483_v11  ;;  %v443_v34 = vunpack.c.l.bf16 %v553_v20  ;;  %v475_v35 = vunpack.c.l.bf16 %v561_v21  ;;  %v567_v36 = vld [vmem:[%s770_s4 + $0x20] sm:$0xff]   ;;  %v507_v38 = vunpack.c.l.bf16 %v568_v24  ;;  %v539_v39 = vunpack.c.l.bf16 %v576_v25  ;;  %v566_v48 = vld [vmem:[%s770_s4 + $0x18] sm:$0xff]   ;;  %v565_v60 = vld [vmem:[%s770_s4 + $0x10] sm:$0xff]  }
   0x8   :  { %194 = vmatpush.msra.mxu2 %v515_v12  ;;  %155 = vmatpush.msra.mxu0 %v448_v16  ;;  %v575_v37 = vld [vmem:[%s770_s4 + $0x60] sm:$0xff]   ;;  %v440_v40 = vunpack.c.h.bf16 %v552_v32  ;;  %v472_v41 = vunpack.c.h.bf16 %v560_v33  ;;  %v504_v42 = vunpack.c.h.bf16 %v567_v36  ;;  %v439_v46 = vunpack.c.l.bf16 %v552_v32  ;;  %v574_v49 = vld [vmem:[%s770_s4 + $0x58] sm:$0xff]   ;;  %v573_v61 = vld [vmem:[%s770_s4 + $0x50] sm:$0xff]  }
   0x9   :  { %214 = vmatpush.msra.mxu3 %v547_v13  ;;  %175 = vmatpush.msra.mxu1 %v480_v17  ;;  %v536_v43 = vunpack.c.h.bf16 %v575_v37  ;;  %v471_v47 = vunpack.c.l.bf16 %v560_v33  ;;  %v503_v50 = vunpack.c.l.bf16 %v567_v36  ;;  %v535_v51 = vunpack.c.l.bf16 %v575_v37  ;;  %v549_v4 = vld [vmem:[%s769_s3 + $0x8] sm:$0xff]   ;;  %v422_v16 = vld [vmem:[%s769_s3] sm:$0xff]  }
   0xa   :  { %195 = vmatpush.msra.mxu2 %v512_v18  ;;  %156 = vmatpush.msra.mxu0 %v447_v22  ;;  %v436_v52 = vunpack.c.h.bf16 %v551_v44  ;;  %v468_v53 = vunpack.c.h.bf16 %v559_v45  ;;  %v500_v54 = vunpack.c.h.bf16 %v566_v48  ;;  %v532_v55 = vunpack.c.h.bf16 %v574_v49  ;;  %v557_v5 = vld [vmem:[%s769_s3 + $0x48] sm:$0xff]   ;;  %v556_v17 = vld [vmem:[%s769_s3 + $0x40] sm:$0xff]  }
   0xb   :  { %215 = vmatpush.msra.mxu3 %v544_v19  ;;  %176 = vmatpush.msra.mxu1 %v479_v23  ;;  %v435_v58 = vunpack.c.l.bf16 %v551_v44  ;;  %v467_v59 = vunpack.c.l.bf16 %v559_v45  ;;  %v499_v62 = vunpack.c.l.bf16 %v566_v48  ;;  %v531_v63 = vunpack.c.l.bf16 %v574_v49  ;;  %v564_v8 = vld [vmem:[%s770_s4 + $0x8] sm:$0xff]   ;;  %v486_v20 = vld [vmem:[%s770_s4] sm:$0xff]  }
   0xc   :  { %196 = vmatpush.msra.mxu2 %v511_v26  ;;  %157 = vmatpush.msra.mxu0 %v444_v28  ;;  %v432_v0 = vunpack.c.h.bf16 %v550_v56  ;;  %v464_v1 = vunpack.c.h.bf16 %v558_v57  ;;  %v496_v2 = vunpack.c.h.bf16 %v565_v60  ;;  %v528_v3 = vunpack.c.h.bf16 %v573_v61  ;;  %v572_v9 = vld [vmem:[%s770_s4 + $0x48] sm:$0xff]   ;;  %v571_v21 = vld [vmem:[%s770_s4 + $0x40] sm:$0xff]  }
   0xd   :  { %216 = vmatpush.msra.mxu3 %v543_v27  ;;  %177 = vmatpush.msra.mxu1 %v476_v29  ;;  %v431_v6 = vunpack.c.l.bf16 %v550_v56  ;;  %v463_v7 = vunpack.c.l.bf16 %v558_v57  ;;  %v495_v10 = vunpack.c.l.bf16 %v565_v60  ;;  %v527_v11 = vunpack.c.l.bf16 %v573_v61  ;;  %v735_v32 = vld [vmem:[%s771_s0] sm:$0xff]  ;;  %v740_v33 = vld [vmem:[%s771_s0 + $0x8] sm:$0xff] }
   0xe   :  { %197 = vmatpush.msra.mxu2 %v508_v30  ;;  %158 = vmatpush.msra.mxu0 %v443_v34  ;;  %v428_v12 = vunpack.c.h.bf16 %v549_v4  ;;  %v460_v13 = vunpack.c.h.bf16 %v557_v5  ;;  %v492_v14 = vunpack.c.h.bf16 %v564_v8  ;;  %v524_v15 = vunpack.c.h.bf16 %v572_v9  ;;  %v233_v37 = vld [vmem:[%s772_s1] sm:$0xff]  ;;  %s594_s1 = smov 80  }
   0xf   :  { %217 = vmatpush.msra.mxu3 %v540_v31  ;;  %178 = vmatpush.msra.mxu1 %v475_v35  ;;  %v427_v18 = vunpack.c.l.bf16 %v549_v4  ;;  %v459_v19 = vunpack.c.l.bf16 %v557_v5  ;;  %v491_v22 = vunpack.c.l.bf16 %v564_v8  ;;  %v523_v23 = vunpack.c.l.bf16 %v572_v9 }
  0x10   :  { %198 = vmatpush.msra.mxu2 %v507_v38  ;;  %159 = vmatpush.msra.mxu0 %v440_v40  ;;  %v424_v24 = vunpack.c.h.bf16 %v422_v16  ;;  %v456_v25 = vunpack.c.h.bf16 %v556_v17  ;;  %v488_v26 = vunpack.c.h.bf16 %v486_v20  ;;  %v520_v27 = vunpack.c.h.bf16 %v571_v21 }
  0x11   :  { %218 = vmatpush.msra.mxu3 %v539_v39  ;;  %179 = vmatpush.msra.mxu1 %v472_v41  ;;  %v423_v28 = vunpack.c.l.bf16 %v422_v16  ;;  %v455_v29 = vunpack.c.l.bf16 %v556_v17  ;;  %v487_v30 = vunpack.c.l.bf16 %v486_v20  ;;  %v519_v31 = vunpack.c.l.bf16 %v571_v21  ;;  %v277_v41 = vld [vmem:[%s773_s2] sm:$0xff]  ;;  %s595_s2 = smov 48  }
  0x12   :  { %199 = vmatpush.msra.mxu2 %v504_v42  ;;  %160 = vmatpush.msra.mxu0 %v439_v46  ;;  %v357_v42 = vld [vmem:[%s774_s5 + $0x8] sm:$0xff]  ;;  %vm350_vm13 = vcmask 654336   ;;  %vm352_vm14 = vcmask 785408   ;;  %vm354_vm15 = vcmask 916480  }
  0x13   :  { %219 = vmatpush.msra.mxu3 %v536_v43  ;;  %180 = vmatpush.msra.mxu1 %v471_v47  ;;  %v356_v43 = vld [vmem:[%s774_s5] sm:$0xff]  ;;  %v360_v44 = vunpack.c.l.bf16 %v357_v42  ;;  %v361_v45 = vunpack.c.h.bf16 %v357_v42  ;;  %s596_s5 = smov 16  }
  0x14   :  { %200 = vmatpush.msra.mxu2 %v503_v50  ;;  %161 = vmatpush.msra.mxu0 %v436_v52  ;;  %v358_v46 = vunpack.c.l.bf16 %v356_v43  ;;  %v359_v47 = vunpack.c.h.bf16 %v356_v43 }
  0x15   :  { %220 = vmatpush.msra.mxu3 %v535_v51  ;;  %181 = vmatpush.msra.mxu1 %v468_v53 }
  0x16   :  { %201 = vmatpush.msra.mxu2 %v500_v54  ;;  %162 = vmatpush.msra.mxu0 %v435_v58 }
  0x17   :  { %221 = vmatpush.msra.mxu3 %v532_v55  ;;  %182 = vmatpush.msra.mxu1 %v467_v59 }
  0x18   :  { %202 = vmatpush.msra.mxu2 %v499_v62  ;;  %163 = vmatpush.msra.mxu0 %v432_v0 }
  0x19   :  { %222 = vmatpush.msra.mxu3 %v531_v63  ;;  %183 = vmatpush.msra.mxu1 %v464_v1 }
  0x1a   :  { %203 = vmatpush.msra.mxu2 %v496_v2  ;;  %164 = vmatpush.msra.mxu0 %v431_v6 }
  0x1b   :  { %223 = vmatpush.msra.mxu3 %v528_v3  ;;  %184 = vmatpush.msra.mxu1 %v463_v7 }
  0x1c   :  { %204 = vmatpush.msra.mxu2 %v495_v10  ;;  %165 = vmatpush.msra.mxu0 %v428_v12 }
  0x1d   :  { %224 = vmatpush.msra.mxu3 %v527_v11  ;;  %185 = vmatpush.msra.mxu1 %v460_v13 }
  0x1e   :  { %205 = vmatpush.msra.mxu2 %v492_v14  ;;  %166 = vmatpush.msra.mxu0 %v427_v18 }
  0x1f   :  { %225 = vmatpush.msra.mxu3 %v524_v15  ;;  %186 = vmatpush.msra.mxu1 %v459_v19 }
  0x20   :  { %206 = vmatpush.msra.mxu2 %v491_v22  ;;  %167 = vmatpush.msra.mxu0 %v424_v24 }
  0x21   :  { %226 = vmatpush.msra.mxu3 %v523_v23  ;;  %187 = vmatpush.msra.mxu1 %v456_v25 }
  0x22   :  { %207 = vmatpush.msra.mxu2 %v488_v26  ;;  %168 = vmatpush.msra.mxu0 %v423_v28 }
  0x23   :  { %227 = vmatpush.msra.mxu3 %v520_v27  ;;  %188 = vmatpush.msra.mxu1 %v455_v29 }
  0x24   :  { %208 = vmatpush.msra.mxu2 %v487_v30  ;;  %169 = vmatmul.f32.vlgmr.msra.gmra.mxu0 %v735_v32 }
  0x25   :  { %228 = vmatpush.msra.mxu3 %v519_v31  ;;  %189 = vmatmul.f32.vlgmr.msra.gmra.mxu1 %v740_v33 }
  0x26   :  { %209 = vmatmul.f32.vlgmr.msra.gmra.mxu2 %v735_v32  ;;  %229 = vmatmul.f32.vlgmr.msra.gmra.mxu3 %v740_v33 }
  0x27   :  { %379 = vmatpush.msrb.mxu2 %v360_v44  ;;  %399 = vmatpush.msrb.mxu3 %v361_v45 }
  0x29   :  { %380 = vmatpush.msrb.mxu2 %v358_v46  ;;  %400 = vmatpush.msrb.mxu3 %v359_v47 }
  0xa1   :  { %v170_v34 = vpop.f32.mrf.mxu0 }
  0xa2   :  { %v190_v35 = vpop.f32.mrf.mxu1 }
  0xa3   :  { %v191_v36 = vadd.f32 %v190_v35, %v170_v34 }
  0xa5   :  { %253 = vmatpush.msrb.mxu0 %v191_v36 }
  0xa6   :  { %415 = vmatmul.msk.f32.vlgmr.msrb.gmra.mxu0 %vm234_vm0, %v233_v37 }
  0xa9   :  { %v210_v38 = vpop.f32.mrf.mxu2  ;;  %v230_v39 = vpop.f32.mrf.mxu3 }
  0xaa   :  { %v231_v40 = vadd.f32 %v230_v39, %v210_v38 }
  0xac   :  { %296 = vmatpush.msrb.mxu1 %v231_v40 }
  0xad   :  { %417 = vmatmul.msk.f32.vlgmr.msrb.gmra.mxu1 %vm234_vm0, %v277_v41 }
 0x123   :  { %v255_v48 = vpop.f32.mrf.mxu0 }
 0x124   :  { %v416_v49 = vmul.f32 -1.442695, %v255_v48 }
 0x126   :  { %586 = vpow2.f32 %v416_v49 }
 0x12a   :  { %v298_v50 = vpop.f32.mrf.mxu1 }
 0x12b   :  { %v418_v51 = vmul.f32 -1.442695, %v298_v50 }
 0x12c   :  { %v587_v52 = vpop.eup %586 }
 0x12d   :  { %v261_v53 = vadd.f32 1.0, %v587_v52  ;;  %588 = vpow2.f32 %v418_v51 }
 0x12f   :  { %590 = vrcp.f32 %v261_v53  ;;  %v273_v59 = vand.u32 2147483648, %v261_v53  ;;  %vm267_vm1 = vweird.f32 %v261_v53  ;;  %v271_v61 = vand.u32 2147483647, %v261_v53 }
 0x131   :  { %v274_v0 = vor.u32 1.1754944e-38, %v273_v59  ;;  %vm272_vm4 = vcmp.eq.f32.partialorder %v271_v61, 8.507059e+37 }
 0x133   :  { %v589_v54 = vpop.eup %588 }
 0x134   :  { %v304_v55 = vadd.f32 1.0, %v589_v54 }
 0x135   :  { %v591_v56 = vpop.eup %590 }
 0x136   :  { %v263_v57 = vmul.f32 %v591_v56, %v261_v53  ;;  %592 = vrcp.f32 %v304_v55  ;;  %vm268_vm2 = vweird.f32 %v591_v56  ;;  %v316_v5 = vand.u32 2147483648, %v304_v55 }
 0x137   :  { %vm269_vm3 = vmor %vm267_vm1, %vm268_vm2  ;;  %v314_v7 = vand.u32 2147483647, %v304_v55  ;;  %vm310_vm6 = vweird.f32 %v304_v55 }
 0x138   :  { %v264_v58 = vsub.f32 1.0, %v263_v57  ;;  %v317_v9 = vor.u32 1.1754944e-38, %v316_v5 }
 0x139   :  { %vm315_vm9 = vcmp.eq.f32.partialorder %v314_v7, 8.507059e+37 }
 0x13a   :  { %v265_v60 = vmul.f32 %v591_v56, %v264_v58 }
 0x13c   :  { %v593_v62 = vpop.eup %592  ;;  %v266_v63 = vadd.f32 %v591_v56, %v265_v60 }
 0x13d   :  { %v306_v1 = vmul.f32 %v593_v62, %v304_v55  ;;  %vm311_vm5 = vweird.f32 %v593_v62 }
 0x13e   :  { %v270_v2 = vsel %vm269_vm3, %v591_v56, %v266_v63  ;;  %vm312_vm7 = vmor %vm310_vm6, %vm311_vm5 }
 0x13f   :  { %v275_v3 = vsel %vm272_vm4, %v274_v0, %v270_v2  ;;  %v307_v4 = vsub.f32 1.0, %v306_v1 }
 0x140   :  { %333 = vrot.lane.b32.xlu2 %v275_v3, %s594_s1  ;;  %327 = vrot.lane.b32.xlu1 %v275_v3, %s595_s2 }
 0x141   :  { %321 = vrot.lane.b32.xlu0 %v275_v3, %s596_s5  ;;  %v308_v6 = vmul.f32 %v593_v62, %v307_v4 }
 0x143   :  { %v309_v8 = vadd.f32 %v593_v62, %v308_v6 }
 0x145   :  { %v313_v10 = vsel %vm312_vm7, %v593_v62, %v309_v8 }
 0x146   :  { %v318_v11 = vsel %vm315_vm9, %v317_v9, %v313_v10 }
 0x147   :  { %419 = vmatmul.msk.f32.vlgmr.msrb.gmra.mxu2 %vm342_vm8, %v318_v11  ;;  %420 = vmatmul.msk.f32.vlgmr.msrb.gmra.mxu3 %vm342_vm8, %v318_v11 }
 0x148   :  { %336 = vrot.lane.b32.xlu2 %v275_v3, %s597_s22  ;;  %330 = vrot.lane.b32.xlu1 %v275_v3, %s598_s23 }
 0x149   :  { %324 = vrot.lane.b32.xlu0 %v275_v3, %s599_s24 }
 0x151   :  { %339 = vrot.lane.b32.xlu0 %v275_v3, %s600_s25 }
 0x19a   :  { %v334_v17 = vpop.permute.xlu2 %333 }
 0x1a2   :  { %v337_v23 = vpop.permute.xlu2 %336 }
 0x1b2   :  { %v328_v13 = vpop.permute.xlu1 %327 }
 0x1b3   :  { %v322_v12 = vpop.permute.xlu0 %321 }
 0x1b4   :  { %v343_v15 = vsel %vm342_vm8, %v275_v3, %v322_v12 }
 0x1ba   :  { %v331_v19 = vpop.permute.xlu1 %330 }
 0x1bb   :  { %v325_v14 = vpop.permute.xlu0 %324 }
 0x1bc   :  { %v345_v16 = vsel %vm344_vm10, %v343_v15, %v325_v14 }
 0x1bd   :  { %v347_v18 = vsel %vm346_vm11, %v345_v16, %v328_v13 }
 0x1be   :  { %v349_v20 = vsel %vm348_vm12, %v347_v18, %v331_v19 }
 0x1bf   :  { %v351_v21 = vsel %vm350_vm13, %v349_v20, %v334_v17 }
 0x1c0   :  { %v353_v24 = vsel %vm352_vm14, %v351_v21, %v337_v23 }
 0x1c3   :  { %v340_v22 = vpop.permute.xlu0 %339 }
 0x1c4   :  { %v355_v25 = vsel %vm354_vm15, %v353_v24, %v340_v22 }
 0x1ca   :  { %v382_v26 = vpop.f32.mrf.mxu2  ;;  %v402_v27 = vpop.f32.mrf.mxu3 }
 0x1cb   :  { %v405_v28 = vmul.f32 %v382_v26, %v355_v25  ;;  %v406_v29 = vmul.f32 %v402_v27, %v355_v25 }
 0x1cd   :  { %v407_v30 = vmul.f32 %v405_v28, %v735_v32  ;;  %v408_v31 = vmul.f32 %v406_v29, %v740_v33 }
 0x1cf   :  { %409 = vst [vmem:[%s775_s6] sm:$0xff] %v407_v30 }
 0x1d0   :  { %410 = vst [vmem:[%s775_s6 + $0x8] sm:$0xff] %v408_v31 }

</bundles_post_ra>
